<compile_context>
chip_gen: v7x
topology: tpu7x:2x2x1
jax: 0.10.0
libtpu: 0.0.40
codegen_flags: <defaults>
</compile_context>

<pallas_src>
import functools

import jax
import jax.numpy as jnp
from jax.experimental import pallas as pl
from jax.experimental.pallas import tpu as pltpu


def _round_up(x, m):
    return (x + m - 1) // m * m


def _final_lane_pad():
    """Lane-pad granularity for the final projection: 256 on v7x, else 128."""
    try:
        kind = jax.devices()[0].device_kind.lower()
    except Exception:
        return 128
    if "v7" in kind or "7x" in kind:
        return 256          # fill the 2x256x256 MXU; v7x is compute-bound here
    return 128              # v5e native 128; v6e is HBM-write-bound -> pad minimally


def _choose_tiling(M, tile_m_max):
    """Sublane-aligned batch tiling; >= 2 tiles when padded M >= 16 (v7x TCs)."""
    m8 = _round_up(M, 8)
    tile_m = min(_round_up(tile_m_max, 8), m8)
    n_tiles = -(-m8 // tile_m)
    if m8 >= 16:
        n_tiles = max(n_tiles, 2)
    tile_m = _round_up(-(-m8 // n_tiles), 8)
    m_pad = _round_up(m8, tile_m)
    return tile_m, m_pad


# --------------------------------------------------------------------------- #
# Kernel
# --------------------------------------------------------------------------- #
def _fused_mlp_kernel(x_ref, *args, num_layers, compute_dtype):
    """One batch tile through the whole MLP.

    args = (w0, b0, w1, b1, ..., w_{L-1}, b_{L-1}, o_ref)
    Weights are pre-transposed [K_l, N_l] (compute_dtype), biases [1, N_l] (f32).
    MXU matmuls accumulate in f32 (preferred_element_type); bias add + ReLU stay
    in f32 on the VPU (free filler when MXU-bound); activations recast to
    compute_dtype between layers.  Intermediates never touch HBM.
    """
    o_ref = args[-1]
    wb = args[:-1]
    h = x_ref[...].astype(compute_dtype)
    for l in range(num_layers):
        w = wb[2 * l][...]
        b = wb[2 * l + 1][...]          # (1, N_l) f32, broadcasts over the tile
        y = jnp.dot(h, w, preferred_element_type=jnp.float32) + b
        if l < num_layers - 1:
            # Dropout == identity in eval mode; ReLU in f32.
            y = jnp.maximum(y, 0.0)
            h = y.astype(compute_dtype)
        else:
            o_ref[...] = y.astype(o_ref.dtype)


# --------------------------------------------------------------------------- #
# One-time parameter preparation (hoisted out of the per-call path)
# --------------------------------------------------------------------------- #
def prepare_mlp_params(params, *, compute_dtype=jnp.bfloat16, final_lane_pad=None):
    """Cast weights to compute_dtype, biases to f32, pad the final layer's
    output dim to a lane-dense multiple (128, or 256 on v7x). Done once."""
    if final_lane_pad is None:
        final_lane_pad = _final_lane_pad()
    num_layers = len(params)
    n_outputs = params[-1][0].shape[1]
    n_out_pad = _round_up(max(n_outputs, final_lane_pad), final_lane_pad)

    prepped = []
    for l, (w, b) in enumerate(params):
        if l == num_layers - 1 and w.shape[1] != n_out_pad:
            w = jnp.pad(w, ((0, 0), (0, n_out_pad - w.shape[1])))
            b = jnp.pad(b, ((0, 0), (0, n_out_pad - b.shape[1])))
        w = jax.block_until_ready(jnp.asarray(w, compute_dtype))
        b = jax.block_until_ready(jnp.asarray(b, jnp.float32))
        prepped.append((w, b))
    return {
        "params": prepped,
        "compute_dtype": compute_dtype,
        "n_outputs": n_outputs,
        "n_out_pad": n_out_pad,
    }


def _weight_specs(params, single_buffer):
    specs = []
    kwargs = dict(pipeline_mode=pl.Buffered(1)) if single_buffer else {}
    for (w, b) in params:
        k_l, n_l = w.shape
        # Constant (0,0) index maps keep weights/biases VMEM-resident across grid.
        specs += [pl.BlockSpec((k_l, n_l), lambda i: (0, 0), **kwargs),
                  pl.BlockSpec((1, n_l), lambda i: (0, 0), **kwargs)]
    return specs


# --------------------------------------------------------------------------- #
# Forward
# --------------------------------------------------------------------------- #
def mlp_forward(prepped, x, *, tile_m=1024, single_buffer_weights=None,
                interpret=False):
    """x: [M, n_inputs] -> [M, n_outputs].  `prepped` from prepare_mlp_params()."""
    params = prepped["params"]
    compute_dtype = prepped["compute_dtype"]
    n_outputs = prepped["n_outputs"]
    n_out_pad = prepped["n_out_pad"]
    num_layers = len(params)

    M, K = x.shape
    tile_m, m_pad = _choose_tiling(M, tile_m)
    grid_m = m_pad // tile_m
    x_p = x if m_pad == M else jnp.pad(x, ((0, m_pad - M), (0, 0)))
    out_dtype = x.dtype

    # ---- VMEM budget: weights (1 or 2 buffers) + double-buffered x/out tiles
    #      + ~3 live (tile_m, width) f32 activation temporaries ----
    w_bytes = sum(w.size * w.dtype.itemsize + b.size * b.dtype.itemsize
                  for w, b in params)
    if single_buffer_weights is None:
        # Only worth the pipeline_mode plumbing when weights are big (v7x case).
        single_buffer_weights = w_bytes > (4 << 20)
    max_width = max(w.shape[1] for w, _ in params)
    io_bytes = (2 * tile_m * K * x_p.dtype.itemsize
                + 2 * tile_m * n_out_pad * jnp.dtype(out_dtype).itemsize)
    act_bytes = 3 * tile_m * max_width * 4
    need = w_bytes * (1 if single_buffer_weights else 2) + io_bytes + act_bytes
    vmem_cap = 48 << 20          # conservative: fits v7x's 64 MiB physical VMEM
    if need > vmem_cap:
        raise ValueError(
            f"fused MLP VMEM footprint ~{need >> 20} MiB exceeds {vmem_cap >> 20} "
            f"MiB; reduce tile_m or width.")
    vmem_limit = int(min(max(2 * need + (4 << 20), 32 << 20), vmem_cap))

    flat_inputs = [x_p]
    for (w, b) in params:
        flat_inputs += [w, b]

    flops = sum(2 * m_pad * w.shape[0] * w.shape[1] for w, _ in params)
    bytes_accessed = (x_p.size * x_p.dtype.itemsize + w_bytes
                      + m_pad * n_out_pad * jnp.dtype(out_dtype).itemsize)

    x_spec = pl.BlockSpec((tile_m, K), lambda i: (i, 0))
    out_spec = pl.BlockSpec((tile_m, n_out_pad), lambda i: (i, 0))

    kernel = functools.partial(
        _fused_mlp_kernel, num_layers=num_layers, compute_dtype=compute_dtype)

    def build(wb_specs):
        return pl.pallas_call(
            kernel,
            out_shape=jax.ShapeDtypeStruct((m_pad, n_out_pad), out_dtype),
            grid_spec=pltpu.PrefetchScalarGridSpec(
                num_scalar_prefetch=0,
                grid=(grid_m,),
                in_specs=[x_spec] + wb_specs,
                out_specs=out_spec,
            ),
            compiler_params=pltpu.CompilerParams(
                # Independent batch tiles; TODO(synk): verify megacore sharding
                # in the bundle dump on v7x, else switch to pltpu.CORE_PARALLEL.
                dimension_semantics=("parallel",),
                vmem_limit_bytes=vmem_limit,
            ),
            cost_estimate=pl.CostEstimate(
                flops=flops, transcendentals=0, bytes_accessed=bytes_accessed),
            interpret=interpret,
        )

    use_1buf = single_buffer_weights and hasattr(pl, "Buffered")
    if use_1buf:
        try:
            out = build(_weight_specs(params, True))(*flat_inputs)
        except Exception:
            # pipeline_mode=Buffered(1) unsupported on this jax/libtpu: fall back
            # to default double-buffering (identical numerics).
            out = build(_weight_specs(params, False))(*flat_inputs)
    else:
        out = build(_weight_specs(params, False))(*flat_inputs)

    return out[:M, :n_outputs]


# --------------------------------------------------------------------------- #
# Init + reference
# --------------------------------------------------------------------------- #
def init_linear_params(key, fan_in, fan_out, dtype=jnp.float32):
    """nn.Linear-style init: U(-1/sqrt(fan_in), 1/sqrt(fan_in)).
    Weight returned pre-transposed as [fan_in, fan_out]."""
    kw, kb = jax.random.split(key)
    bound = 1.0 / jnp.sqrt(float(fan_in))
    w = jax.random.uniform(kw, (fan_in, fan_out), dtype, minval=-bound, maxval=bound)
    b = jax.random.uniform(kb, (1, fan_out), dtype, minval=-bound, maxval=bound)
    return w, b


def init_mlp_params(key, n_inputs, n_outputs, width=256, depth=3):
    keys = jax.random.split(key, depth)
    params = [init_linear_params(keys[0], n_inputs, width)]            # input
    for d in range(depth - 2):                                         # hiddens
        params.append(init_linear_params(keys[1 + d], width, width))
    params.append(init_linear_params(keys[depth - 1], width, n_outputs))  # output
    return params


def _reference_forward(params, x, compute_dtype=jnp.bfloat16):
    """Plain-JAX reference using the same bf16-input / f32-accumulate math.
    (For a strict f32 PyTorch match, pass compute_dtype=jnp.float32 to both
    prepare_mlp_params and this reference.)"""
    h = x
    for i, (w, b) in enumerate(params):
        y = jnp.dot(h.astype(compute_dtype), w.astype(compute_dtype),
                    preferred_element_type=jnp.float32) + b.astype(jnp.float32)
        if i < len(params) - 1:
            y = jnp.maximum(y, 0.0)
        h = y
    return h.astype(x.dtype)


if __name__ == "__main__":
    key = jax.random.PRNGKey(0)
    k_x, k_p = jax.random.split(key)

    batch, n_inputs, n_outputs, width, depth = 8, 32, 16, 256, 3
    x = jax.random.normal(k_x, (batch, n_inputs), jnp.float32)
    params = init_mlp_params(k_p, n_inputs, n_outputs, width=width, depth=depth)

    prepped = prepare_mlp_params(params)             # one-time weight prep
    out = jax.block_until_ready(mlp_forward(prepped, x))

    ref = _reference_forward(params, x)
    assert out.shape == (batch, n_outputs), out.shape
    assert jnp.allclose(out, ref, atol=5e-3, rtol=5e-3), \
        float(jnp.max(jnp.abs(out - ref)))

    print("KERNEL_OK")
</pallas_src>

<mosaic_0001>
module attributes {stable_mosaic.version = 11 : i64} {
  func.func @_fused_mlp_kernel(%arg0: i32, %arg1: memref<8x32xf32, #tpu.memory_space<vmem>>, %arg2: memref<32x256xbf16, #tpu.memory_space<vmem>>, %arg3: memref<1x256xf32, #tpu.memory_space<vmem>>, %arg4: memref<256x256xbf16, #tpu.memory_space<vmem>>, %arg5: memref<1x256xf32, #tpu.memory_space<vmem>>, %arg6: memref<256x128xbf16, #tpu.memory_space<vmem>>, %arg7: memref<1x128xf32, #tpu.memory_space<vmem>>, %arg8: memref<8x128xf32, #tpu.memory_space<vmem>>) attributes {dimension_semantics = [#tpu.dimension_semantics<parallel>], iteration_bounds = array<i64: 1>, scalar_prefetch = 0 : i64, scratch_operands = 0 : i64, tpu.core_type = #tpu.core_type<tc>, window_params = [{transform_indices = @transform_0, window_bounds = array<i64: 8, 32>}, {pipeline_mode = #tpu.pipeline_mode<synchronous>, transform_indices = @transform_1, window_bounds = array<i64: 32, 256>}, {pipeline_mode = #tpu.pipeline_mode<synchronous>, transform_indices = @transform_2, window_bounds = array<i64: 1, 256>}, {pipeline_mode = #tpu.pipeline_mode<synchronous>, transform_indices = @transform_3, window_bounds = array<i64: 256, 256>}, {pipeline_mode = #tpu.pipeline_mode<synchronous>, transform_indices = @transform_4, window_bounds = array<i64: 1, 256>}, {pipeline_mode = #tpu.pipeline_mode<synchronous>, transform_indices = @transform_5, window_bounds = array<i64: 256, 128>}, {pipeline_mode = #tpu.pipeline_mode<synchronous>, transform_indices = @transform_6, window_bounds = array<i64: 1, 128>}, {transform_indices = @transform_7, window_bounds = array<i64: 8, 128>}]} {
    %c0 = arith.constant 0 : index
    %c0_0 = arith.constant 0 : index
    %0 = vector.load %arg1[%c0, %c0_0] : memref<8x32xf32, #tpu.memory_space<vmem>>, vector<8x32xf32>
    %1 = arith.truncf %0 : vector<8x32xf32> to vector<8x32xbf16>
    %c0_1 = arith.constant 0 : index
    %c0_2 = arith.constant 0 : index
    %2 = vector.load %arg2[%c0_1, %c0_2] : memref<32x256xbf16, #tpu.memory_space<vmem>>, vector<32x256xbf16>
    %c0_3 = arith.constant 0 : index
    %c0_4 = arith.constant 0 : index
    %3 = vector.load %arg3[%c0_3, %c0_4] : memref<1x256xf32, #tpu.memory_space<vmem>>, vector<1x256xf32>
    %cst = arith.constant dense<0.000000e+00> : vector<8x256xf32>
    %4 = tpu.matmul %1, %2, %cst {dimension_numbers = #tpu.dot_dimension_numbers<[1], [0], [0], [1], [0, 0, 1, 1], [], []>} : vector<8x32xbf16>, vector<32x256xbf16>, vector<8x256xf32> -> vector<8x256xf32>
    %5 = vector.broadcast %3 : vector<1x256xf32> to vector<8x256xf32>
    %6 = arith.addf %4, %5 : vector<8x256xf32>
    %cst_5 = arith.constant 0.000000e+00 : f32
    %7 = vector.broadcast %cst_5 : f32 to vector<8x256xf32>
    %8 = arith.maximumf %6, %7 : vector<8x256xf32>
    %9 = arith.truncf %8 : vector<8x256xf32> to vector<8x256xbf16>
    %c0_6 = arith.constant 0 : index
    %c0_7 = arith.constant 0 : index
    %10 = vector.load %arg4[%c0_6, %c0_7] : memref<256x256xbf16, #tpu.memory_space<vmem>>, vector<256x256xbf16>
    %c0_8 = arith.constant 0 : index
    %c0_9 = arith.constant 0 : index
    %11 = vector.load %arg5[%c0_8, %c0_9] : memref<1x256xf32, #tpu.memory_space<vmem>>, vector<1x256xf32>
    %cst_10 = arith.constant dense<0.000000e+00> : vector<8x256xf32>
    %12 = tpu.matmul %9, %10, %cst_10 {dimension_numbers = #tpu.dot_dimension_numbers<[1], [0], [0], [1], [0, 0, 1, 1], [], []>} : vector<8x256xbf16>, vector<256x256xbf16>, vector<8x256xf32> -> vector<8x256xf32>
    %13 = vector.broadcast %11 : vector<1x256xf32> to vector<8x256xf32>
    %14 = arith.addf %12, %13 : vector<8x256xf32>
    %cst_11 = arith.constant 0.000000e+00 : f32
    %15 = vector.broadcast %cst_11 : f32 to vector<8x256xf32>
    %16 = arith.maximumf %14, %15 : vector<8x256xf32>
    %17 = arith.truncf %16 : vector<8x256xf32> to vector<8x256xbf16>
    %c0_12 = arith.constant 0 : index
    %c0_13 = arith.constant 0 : index
    %18 = vector.load %arg6[%c0_12, %c0_13] : memref<256x128xbf16, #tpu.memory_space<vmem>>, vector<256x128xbf16>
    %c0_14 = arith.constant 0 : index
    %c0_15 = arith.constant 0 : index
    %19 = vector.load %arg7[%c0_14, %c0_15] : memref<1x128xf32, #tpu.memory_space<vmem>>, vector<1x128xf32>
    %cst_16 = arith.constant dense<0.000000e+00> : vector<8x128xf32>
    %20 = tpu.matmul %17, %18, %cst_16 {dimension_numbers = #tpu.dot_dimension_numbers<[1], [0], [0], [1], [0, 0, 1, 1], [], []>} : vector<8x256xbf16>, vector<256x128xbf16>, vector<8x128xf32> -> vector<8x128xf32>
    %21 = vector.broadcast %19 : vector<1x128xf32> to vector<8x128xf32>
    %22 = arith.addf %20, %21 : vector<8x128xf32>
    %c0_17 = arith.constant 0 : index
    %c0_18 = arith.constant 0 : index
    %23 = vector.load %arg8[%c0_17, %c0_18] : memref<8x128xf32, #tpu.memory_space<vmem>>, vector<8x128xf32>
    tpu.vector_store %arg8[%c0_17, %c0_18], %22 {strides = array<i32>} : memref<8x128xf32, #tpu.memory_space<vmem>>, vector<8x128xf32>,
    return
  }
  func.func @transform_0(%arg0: i32) -> (i32, i32) {
    %c0_i32 = arith.constant 0 : i32
    %c0_i32_0 = arith.constant 0 : i32
    return %arg0, %c0_i32 : i32, i32
  }
  func.func @transform_1(%arg0: i32) -> (i32, i32) {
    %c0_i32 = arith.constant 0 : i32
    %c0_i32_0 = arith.constant 0 : i32
    %c0_i32_1 = arith.constant 0 : i32
    return %c0_i32, %c0_i32_0 : i32, i32
  }
  func.func @transform_2(%arg0: i32) -> (i32, i32) {
    %c0_i32 = arith.constant 0 : i32
    %c0_i32_0 = arith.constant 0 : i32
    %c0_i32_1 = arith.constant 0 : i32
    return %c0_i32, %c0_i32_0 : i32, i32
  }
  func.func @transform_3(%arg0: i32) -> (i32, i32) {
    %c0_i32 = arith.constant 0 : i32
    %c0_i32_0 = arith.constant 0 : i32
    %c0_i32_1 = arith.constant 0 : i32
    return %c0_i32, %c0_i32_0 : i32, i32
  }
  func.func @transform_4(%arg0: i32) -> (i32, i32) {
    %c0_i32 = arith.constant 0 : i32
    %c0_i32_0 = arith.constant 0 : i32
    %c0_i32_1 = arith.constant 0 : i32
    return %c0_i32, %c0_i32_0 : i32, i32
  }
  func.func @transform_5(%arg0: i32) -> (i32, i32) {
    %c0_i32 = arith.constant 0 : i32
    %c0_i32_0 = arith.constant 0 : i32
    %c0_i32_1 = arith.constant 0 : i32
    return %c0_i32, %c0_i32_0 : i32, i32
  }
  func.func @transform_6(%arg0: i32) -> (i32, i32) {
    %c0_i32 = arith.constant 0 : i32
    %c0_i32_0 = arith.constant 0 : i32
    %c0_i32_1 = arith.constant 0 : i32
    return %c0_i32, %c0_i32_0 : i32, i32
  }
  func.func @transform_7(%arg0: i32) -> (i32, i32) {
    %c0_i32 = arith.constant 0 : i32
    %c0_i32_0 = arith.constant 0 : i32
    return %arg0, %c0_i32 : i32, i32
  }
}

</mosaic_0001>

<bundles_post_ra>
// kernel: tpu_custom_call.1
= control target key start
LH: loop header
LB: loop body
LE: loop exit
PB: predicated region body
PF: predicated region fallthrough
CT: control target
= control target key end

     0   :  { %12 = vsyncpa [#allocation3], 0  ;;  %s1009_s0 = inlined_call_operand.hbm [shape: f32[8,32], index: 0, kind: input, shape index: {}]   ;;  %s1010_s1 = inlined_call_operand.hbm [shape: bf16[32,256], index: 1, kind: input, shape index: {}]   ;;  %s1011_s2 = inlined_call_operand.vmem [shape: f32[1,256], index: 2, kind: input, shape index: {}]   ;;  %s1012_s3 = inlined_call_operand.hbm [shape: bf16[256,256], index: 3, kind: input, shape index: {}]   ;;  %s1013_s4 = inlined_call_operand.vmem [shape: f32[1,256], index: 4, kind: input, shape index: {}]   ;;  %s1014_s5 = inlined_call_operand.hbm [shape: bf16[256,128], index: 5, kind: input, shape index: {}]   ;;  %s1015_s6 = inlined_call_operand.vmem [shape: f32[1,128], index: 6, kind: input, shape index: {}]   ;;  %s1016_s7 = inlined_call_operand.hbm [shape: f32[8,128], index: 7, kind: output, shape index: {}]  }
   0x1   :  { %13 = vsyncpa [#allocation6], 0 }
   0x2   :  { %14 = vsyncpa [#allocation9], 0 }
   0x3   :  { %15 = vsyncpa [#allocation4], 0  ;;  %s884_s24 = smov [#allocation5]   ;;  %s766_s28 = scalar_lea.hbm %s1010_s1, 512 }
   0x4   :  { %s31_s25 = sshll.u32 %s884_s24, 4  ;;  %p767_p0 = scmp.ne.s32.totalorder %s1010_s1, %s766_s28  ;;  %s32_s25 = int_to_ptr.vmem [resolvable:$true] %s31_s25 }
   0x5   :  { %p770_p1 = scmp.lt.u32.totalorder %s766_s28, %s1010_s1 }
   0x7   :  { %p772_p2 = pnand %p770_p1, %p767_p0 }
   0x9   :  { %775 = shalt.err (!%p772_p2)
}
   0xa   :  { %s776_s10 = scalar_lea.vmem %s32_s25, 512  ;;  %p781_p4 = scmp.lt.s32.totalorder %s32_s25, %s32_s25 }
   0xb   :  { %p777_p3 = scmp.ne.s32.totalorder %s32_s25, %s776_s10  ;;  %p782_p5 = scmp.lt.s32.totalorder %s776_s10, %s776_s10 }
   0xd   :  { %p783_p6 = por %p782_p5, %p781_p4 }
   0xf   :  { %p784_p7 = pnand %p783_p6, %p777_p3 }
  0x11   :  { %787 = shalt.err (!%p784_p7)
}
  0x12   :  { %s885_s11 = smov 128   ;;  %s886_s12 = smov 8  }
  0x13   :  { %37 = dma.hbm_to_vmem [thread:$0]  %s1010_s1, 512, %s32_s25, [#allocation6], %s885_s11, %s885_s11, %s886_s12  }
  0x14   :  { %s887_s15 = smov [#allocation2]   ;;  %s888_s17 = smov [#allocation7]  }
  0x15   :  { %s22_s16 = sshll.u32 %s887_s15, 4  ;;  %s45_s18 = sshll.u32 %s888_s17, 4  ;;  %s23_s16 = int_to_ptr.vmem [resolvable:$true] %s22_s16  ;;  %s46_s18 = int_to_ptr.vmem [resolvable:$true] %s45_s18 }
  0x16   :  { %s788_s21 = scalar_lea.hbm %s1009_s0, 128 }
  0x17   :  { %p789_p8 = scmp.ne.s32.totalorder %s1009_s0, %s788_s21  ;;  %p792_p9 = scmp.lt.u32.totalorder %s788_s21, %s1009_s0 }
  0x19   :  { %p794_p10 = pnand %p792_p9, %p789_p8 }
  0x1b   :  { %797 = shalt.err (!%p794_p10)
}
  0x1c   :  { %s798_s1 = scalar_lea.vmem %s23_s16, 128  ;;  %p803_p12 = scmp.lt.s32.totalorder %s23_s16, %s23_s16 }
  0x1d   :  { %p799_p11 = scmp.ne.s32.totalorder %s23_s16, %s798_s1  ;;  %p804_p13 = scmp.lt.s32.totalorder %s798_s1, %s798_s1 }
  0x1f   :  { %p805_p0 = por %p804_p13, %p803_p12 }
  0x21   :  { %p806_p1 = pnand %p805_p0, %p799_p11 }
  0x23   :  { %809 = shalt.err (!%p806_p1)
}
  0x24   :  { %25 = dma.hbm_to_vmem [thread:$0]  %s1009_s0, 128, %s23_s16, [#allocation3]  }
  0x25   :  { %s810_s30 = scalar_lea.hbm %s1012_s3, 4096 }
  0x26   :  { %p811_p2 = scmp.ne.s32.totalorder %s1012_s3, %s810_s30  ;;  %p814_p3 = scmp.lt.u32.totalorder %s810_s30, %s1012_s3 }
  0x28   :  { %p816_p4 = pnand %p814_p3, %p811_p2 }
  0x2a   :  { %819 = shalt.err (!%p816_p4)
}
  0x2b   :  { %s820_s14 = scalar_lea.vmem %s46_s18, 4096  ;;  %p825_p6 = scmp.lt.s32.totalorder %s46_s18, %s46_s18 }
  0x2c   :  { %p821_p5 = scmp.ne.s32.totalorder %s46_s18, %s820_s14  ;;  %p826_p7 = scmp.lt.s32.totalorder %s820_s14, %s820_s14 }
  0x2e   :  { %p827_p8 = por %p826_p7, %p825_p6 }
  0x30   :  { %p828_p9 = pnand %p827_p8, %p821_p5 }
  0x32   :  { %831 = shalt.err (!%p828_p9)
}
  0x33   :  { %51 = dma.hbm_to_vmem [thread:$0]  %s1012_s3, 4096, %s46_s18, [#allocation6], %s885_s11, %s885_s11, %s886_s12  }
  0x34   :  { %s889_s16 = smov [#allocation8]   ;;  %s832_s21 = scalar_lea.hbm %s1014_s5, 2048 }
  0x35   :  { %s59_s17 = sshll.u32 %s889_s16, 4  ;;  %p833_p10 = scmp.ne.s32.totalorder %s1014_s5, %s832_s21  ;;  %s60_s17 = int_to_ptr.vmem [resolvable:$true] %s59_s17 }
  0x36   :  { %p836_p11 = scmp.lt.u32.totalorder %s832_s21, %s1014_s5 }
  0x38   :  { %p838_p12 = pnand %p836_p11, %p833_p10 }
  0x3a   :  { %841 = shalt.err (!%p838_p12)
}
  0x3b   :  { %s842_s1 = scalar_lea.vmem %s60_s17, 2048  ;;  %p847_p0 = scmp.lt.s32.totalorder %s60_s17, %s60_s17 }
  0x3c   :  { %p843_p13 = scmp.ne.s32.totalorder %s60_s17, %s842_s1  ;;  %p848_p1 = scmp.lt.s32.totalorder %s842_s1, %s842_s1 }
  0x3e   :  { %p849_p2 = por %p848_p1, %p847_p0 }
  0x40   :  { %p850_p3 = pnand %p849_p2, %p843_p13 }
  0x42   :  { %853 = shalt.err (!%p850_p3)
}
  0x43   :  { %s890_s3 = smov 64   ;;  %s891_s11 = smov 4  }
  0x44   :  { %65 = dma.hbm_to_vmem [thread:$0]  %s1014_s5, 2048, %s60_s17, [#allocation9], %s890_s3, %s890_s3, %s891_s11  }
  0x45   :  { %876 = dma.done.wait [#allocation3], 128  }
  0x46   :  { %877 = vsyncadd [#allocation3], 4294967168 }
  0x47   :  { %878 = dma.done.wait [#allocation6], 4608  }
  0x48   :  { %879 = vsyncadd [#allocation6], 4294962688 }
  0x49   :  { %880 = dma.done.wait [#allocation9], 2048  }
  0x4a   :  { %881 = vsyncadd [#allocation9], 4294965248  ;;  %v892_v0 = vmov 0   ;;  %v696_v1 = vld [vmem:[#allocation5 + $0x4] ss:$8 sps:$4 sm:$0xff]   ;;  %v81_v5 = vld [vmem:[#allocation2] sm:$0xff]  ;;  %v89_v51 = vlaneseq }
  0x4b   :  { %155 = vmatprep.mubr.bf16.mxu0 %v892_v0  ;;  %v698_v2 = vld [vmem:[#allocation5] ss:$8 sps:$4 sm:$0xff]   ;;  %123 = vmatprep.subr.bf16.mxu0 %v696_v1  ;;  %v699_v3 = vld [vmem:[#allocation5 + $0x14] ss:$8 sps:$4 sm:$0xff]   ;;  %v701_v4 = vld [vmem:[#allocation5 + $0x10] ss:$8 sps:$4 sm:$0xff]   ;;  %v82_v9 = vpack.c.bf16 %v81_v5, %v81_v5 }
  0x4c   :  { %124 = vmatpush1.bf16.msra.mxu0 %v698_v2  ;;  %v702_v6 = vld [vmem:[#allocation7 + $0x4] ss:$8 sps:$4 sm:$0xff]   ;;  %v704_v7 = vld [vmem:[#allocation7] ss:$8 sps:$4 sm:$0xff]   ;;  %v705_v8 = vld [vmem:[#allocation7 + $0x14] ss:$8 sps:$4 sm:$0xff]  }
  0x4d   :  { %125 = vmatprep.subr.bf16.mxu0 %v699_v3  ;;  %372 = vmatprep.subr.bf16.mxu1 %v702_v6  ;;  %v707_v10 = vld [vmem:[#allocation7 + $0x10] ss:$8 sps:$4 sm:$0xff]   ;;  %vm119_vm0 = vcmask 261120   ;;  %v708_v11 = vld [vmem:[#allocation7 + $0x24] ss:$8 sps:$4 sm:$0xff]   ;;  %v90_v52 = vshrl.u32 %v89_v51, 7 }
  0x4e   :  { %373 = vmatpush1.bf16.msra.mxu1 %v704_v7  ;;  %v710_v12 = vld [vmem:[#allocation7 + $0x20] ss:$8 sps:$4 sm:$0xff]   ;;  %v711_v13 = vld [vmem:[#allocation7 + $0x34] ss:$8 sps:$4 sm:$0xff]   ;;  %v713_v14 = vld [vmem:[#allocation7 + $0x30] ss:$8 sps:$4 sm:$0xff]  }
  0x4f   :  { %374 = vmatprep.subr.bf16.mxu1 %v705_v8  ;;  %v714_v15 = vld [vmem:[#allocation7 + $0x44] ss:$8 sps:$4 sm:$0xff]   ;;  %v716_v16 = vld [vmem:[#allocation7 + $0x40] ss:$8 sps:$4 sm:$0xff]   ;;  %v717_v17 = vld [vmem:[#allocation7 + $0x54] ss:$8 sps:$4 sm:$0xff]  }
  0x50   :  { %126 = vmatpush1.bf16.msra.mxu0 %v701_v4  ;;  %v719_v18 = vld [vmem:[#allocation7 + $0x50] ss:$8 sps:$4 sm:$0xff]   ;;  %v720_v19 = vld [vmem:[#allocation7 + $0x64] ss:$8 sps:$4 sm:$0xff]   ;;  %v722_v20 = vld [vmem:[#allocation7 + $0x60] ss:$8 sps:$4 sm:$0xff]  }
  0x51   :  { %v723_v21 = vld [vmem:[#allocation7 + $0x74] ss:$8 sps:$4 sm:$0xff]   ;;  %v725_v22 = vld [vmem:[#allocation7 + $0x70] ss:$8 sps:$4 sm:$0xff]   ;;  %v726_v23 = vld [vmem:[#allocation7 + $0x84] ss:$8 sps:$4 sm:$0xff]  }
  0x52   :  { %375 = vmatpush1.bf16.msra.mxu1 %v707_v10  ;;  %v728_v24 = vld [vmem:[#allocation7 + $0x80] ss:$8 sps:$4 sm:$0xff]   ;;  %v729_v25 = vld [vmem:[#allocation7 + $0x94] ss:$8 sps:$4 sm:$0xff]   ;;  %v731_v26 = vld [vmem:[#allocation7 + $0x90] ss:$8 sps:$4 sm:$0xff]  }
  0x53   :  { %614 = vmatmul.mubr.msk.bf16.vlgmr.msra.gmra.mrb[0].mxu0 %vm119_vm0, %v82_v9  ;;  %376 = vmatprep.subr.bf16.mxu1 %v708_v11  ;;  %v732_v27 = vld [vmem:[#allocation7 + $0xa4] ss:$8 sps:$4 sm:$0xff]   ;;  %v734_v28 = vld [vmem:[#allocation7 + $0xa0] ss:$8 sps:$4 sm:$0xff]   ;;  %v735_v29 = vld [vmem:[#allocation7 + $0xb4] ss:$8 sps:$4 sm:$0xff]  }
  0x54   :  { %v737_v30 = vld [vmem:[#allocation7 + $0xb0] ss:$8 sps:$4 sm:$0xff]   ;;  %v738_v31 = vld [vmem:[#allocation7 + $0xc4] ss:$8 sps:$4 sm:$0xff]   ;;  %v740_v32 = vld [vmem:[#allocation7 + $0xc0] ss:$8 sps:$4 sm:$0xff]  }
  0x55   :  { %v741_v33 = vld [vmem:[#allocation7 + $0xd4] ss:$8 sps:$4 sm:$0xff]   ;;  %v743_v34 = vld [vmem:[#allocation7 + $0xd0] ss:$8 sps:$4 sm:$0xff]   ;;  %v744_v35 = vld [vmem:[#allocation7 + $0xe4] ss:$8 sps:$4 sm:$0xff]  }
  0x56   :  { %377 = vmatpush1.bf16.msra.mxu1 %v710_v12  ;;  %v746_v36 = vld [vmem:[#allocation7 + $0xe0] ss:$8 sps:$4 sm:$0xff]   ;;  %v747_v37 = vld [vmem:[#allocation7 + $0xf4] ss:$8 sps:$4 sm:$0xff]   ;;  %v749_v38 = vld [vmem:[#allocation7 + $0xf0] ss:$8 sps:$4 sm:$0xff]  }
  0x57   :  { %378 = vmatprep.subr.bf16.mxu1 %v711_v13  ;;  %v750_v39 = vld [vmem:[#allocation8 + $0x40] sm:$0xff]   ;;  %v752_v41 = vld [vmem:[#allocation8 + $0x48] sm:$0xff]   ;;  %v754_v43 = vld [vmem:[#allocation8 + $0x50] sm:$0xff]   ;;  %v91_v53 = vsub.s32 0, %v90_v52  ;;  %v95_v55 = vsub.s32 1, %v90_v52 }
  0x58   :  { %v751_v40 = vld [vmem:[#allocation8] sm:$0xff]   ;;  %664 = vmatprep.subr.bf16.mxu0 %v750_v39  ;;  %v753_v42 = vld [vmem:[#allocation8 + $0x8] sm:$0xff]   ;;  %v755_v44 = vld [vmem:[#allocation8 + $0x10] sm:$0xff]  }
  0x59   :  { %665 = vmatpush3.bf16.msra.mxu0 %v751_v40  ;;  %v756_v45 = vld [vmem:[#allocation8 + $0x58] sm:$0xff]   ;;  %v758_v47 = vld [vmem:[#allocation8 + $0x60] sm:$0xff]   ;;  %v760_v49 = vld [vmem:[#allocation8 + $0x68] sm:$0xff]  }
  0x5a   :  { %379 = vmatpush1.bf16.msra.mxu1 %v713_v14  ;;  %666 = vmatprep.subr.bf16.mxu0 %v752_v41  ;;  %v757_v46 = vld [vmem:[#allocation8 + $0x18] sm:$0xff]   ;;  %v759_v48 = vld [vmem:[#allocation8 + $0x20] sm:$0xff]   ;;  %v761_v50 = vld [vmem:[#allocation8 + $0x28] sm:$0xff]  }
  0x5b   :  { %380 = vmatprep.subr.bf16.mxu1 %v714_v15  ;;  %v87_v54 = vld [vmem:[%s1011_s2] sm:$0x3]  ;;  %v762_v4 = vld [vmem:[#allocation8 + $0x70] sm:$0xff]  }
  0x5c   :  { %v92_v56 = vrot.slane %v87_v54, %v91_v53  ;;  %v96_v57 = vrot.slane %v87_v54, %v95_v55  ;;  %v763_v5 = vld [vmem:[#allocation8 + $0x30] sm:$0xff]   ;;  %v764_v6 = vld [vmem:[#allocation8 + $0x78] sm:$0xff]  }
  0x5d   :  { %667 = vmatpush3.bf16.msra.mxu0 %v753_v42  ;;  %v765_v7 = vld [vmem:[#allocation8 + $0x38] sm:$0xff]  }
  0x5e   :  { %381 = vmatpush1.bf16.msra.mxu1 %v716_v16  ;;  %668 = vmatprep.subr.bf16.mxu0 %v754_v43  ;;  %v200_v8 = vld [vmem:[%s1013_s4] sm:$0x3]  ;;  %s893_s4 = smov [#allocation10]  }
  0x5f   :  { %382 = vmatprep.subr.bf16.mxu1 %v717_v17  ;;  %v205_v9 = vrot.slane %v200_v8, %v91_v53  ;;  %v209_v10 = vrot.slane %v200_v8, %v95_v55  ;;  %s599_s30 = sshll.u32 %s893_s4, 4  ;;  %s600_s30 = int_to_ptr.vmem [resolvable:$true] %s599_s30 }
  0x60   :  { %s854_s8 = scalar_lea.vmem %s600_s30, 128  ;;  %p859_p5 = scmp.lt.s32.totalorder %s600_s30, %s600_s30 }
  0x61   :  { %669 = vmatpush3.bf16.msra.mxu0 %v755_v44  ;;  %p855_p4 = scmp.ne.s32.totalorder %s600_s30, %s854_s8  ;;  %p860_p6 = scmp.lt.s32.totalorder %s854_s8, %s854_s8 }
  0x62   :  { %383 = vmatpush1.bf16.msra.mxu1 %v719_v18  ;;  %670 = vmatprep.subr.bf16.mxu0 %v756_v45 }
  0x63   :  { %384 = vmatprep.subr.bf16.mxu1 %v720_v19  ;;  %p861_p7 = por %p860_p6, %p859_p5 }
  0x65   :  { %671 = vmatpush3.bf16.msra.mxu0 %v757_v46  ;;  %p862_p8 = pnand %p861_p7, %p855_p4 }
  0x66   :  { %385 = vmatpush1.bf16.msra.mxu1 %v722_v20  ;;  %672 = vmatprep.subr.bf16.mxu0 %v758_v47 }
  0x67   :  { %386 = vmatprep.subr.bf16.mxu1 %v723_v21 }
  0x69   :  { %673 = vmatpush3.bf16.msra.mxu0 %v759_v48 }
  0x6a   :  { %387 = vmatpush1.bf16.msra.mxu1 %v725_v22  ;;  %674 = vmatprep.subr.bf16.mxu0 %v760_v49  ;;  %v647_v22 = vld [vmem:[%s1015_s6] ss:$0 sm:$0xff] }
  0x6b   :  { %388 = vmatprep.subr.bf16.mxu1 %v726_v23 }
  0x6d   :  { %675 = vmatpush3.bf16.msra.mxu0 %v761_v50 }
  0x6e   :  { %389 = vmatpush1.bf16.msra.mxu1 %v728_v24  ;;  %676 = vmatprep.subr.bf16.mxu0 %v762_v4 }
  0x6f   :  { %390 = vmatprep.subr.bf16.mxu1 %v729_v25 }
  0x71   :  { %677 = vmatpush3.bf16.msra.mxu0 %v763_v5 }
  0x72   :  { %391 = vmatpush1.bf16.msra.mxu1 %v731_v26  ;;  %678 = vmatprep.subr.bf16.mxu0 %v764_v6 }
  0x73   :  { %392 = vmatprep.subr.bf16.mxu1 %v732_v27 }
  0x75   :  { %679 = vmatpush3.bf16.msra.mxu0 %v765_v7 }
  0x76   :  { %393 = vmatpush1.bf16.msra.mxu1 %v734_v28 }
  0x77   :  { %394 = vmatprep.subr.bf16.mxu1 %v735_v29 }
  0x7a   :  { %395 = vmatpush1.bf16.msra.mxu1 %v737_v30 }
  0x7b   :  { %396 = vmatprep.subr.bf16.mxu1 %v738_v31 }
  0x7e   :  { %397 = vmatpush1.bf16.msra.mxu1 %v740_v32 }
  0x7f   :  { %398 = vmatprep.subr.bf16.mxu1 %v741_v33 }
  0x82   :  { %399 = vmatpush1.bf16.msra.mxu1 %v743_v34 }
  0x83   :  { %400 = vmatprep.subr.bf16.mxu1 %v744_v35 }
  0x86   :  { %401 = vmatpush1.bf16.msra.mxu1 %v746_v36 }
  0x87   :  { %402 = vmatprep.subr.bf16.mxu1 %v747_v37 }
  0x8a   :  { %403 = vmatpush1.bf16.msra.mxu1 %v749_v38 }
 0x126   :  { %v157_v58 = vpop.f32.mrb[0].mxu0 }
 0x127   :  { %v158_v59 = vadd.f32 %v157_v58, %v92_v56  ;;  %v159_v60 = vpop.f32.mrb[1].mxu0 }
 0x128   :  { %v160_v61 = vadd.f32 %v159_v60, %v96_v57  ;;  %v161_v62 = vpop.f32.mrb[2].mxu0 }
 0x129   :  { %v164_v63 = vmax.f32 %v158_v59, 0.0  ;;  %v162_v0 = vpop.f32.mrb[3].mxu0 }
 0x12a   :  { %v165_v1 = vmax.f32 %v160_v61, 0.0 }
 0x12b   :  { %v166_v3 = vpack.c.bf16 %v164_v63, %v164_v63 }
 0x12c   :  { %v167_v2 = vpack.c.bf16 %v165_v1, %v165_v1 }
 0x12e   :  { %404 = vmatprep.mubr.bf16.mxu1 %v167_v2 }
 0x12f   :  { %405 = vmatmul.mubr.bf16.vlgmr.msra.gmra.mrb[0].mxu1 %v166_v3 }
 0x202   :  { %v406_v11 = vpop.f32.mrb[0].mxu1 }
 0x203   :  { %v407_v12 = vadd.f32 %v406_v11, %v205_v9  ;;  %v408_v13 = vpop.f32.mrb[1].mxu1 }
 0x204   :  { %v409_v14 = vadd.f32 %v408_v13, %v209_v10  ;;  %v410_v15 = vpop.f32.mrb[2].mxu1 }
 0x205   :  { %v413_v16 = vmax.f32 %v407_v12, 0.0  ;;  %v411_v17 = vpop.f32.mrb[3].mxu1 }
 0x206   :  { %v414_v18 = vmax.f32 %v409_v14, 0.0 }
 0x207   :  { %v415_v20 = vpack.c.bf16 %v413_v16, %v413_v16 }
 0x208   :  { %v416_v19 = vpack.c.bf16 %v414_v18, %v414_v18 }
 0x20a   :  { %584 = vmatprep.mubr.bf16.mxu0 %v416_v19 }
 0x20b   :  { %585 = vmatmul.mubr.bf16.vlgmr.msra.gmra.mrb[4].mxu0 %v415_v20 }
 0x2de   :  { %v680_v21 = vpop.f32.mrb[4].mxu0 }
 0x2df   :  { %v681_v23 = vpop.f32.mrb[5].mxu0 }
 0x2e0   :  { %v682_v24 = vadd.f32 %v681_v23, %v680_v21  ;;  %v683_v25 = vpop.f32.mrb[6].mxu0 }
 0x2e1   :  { %v684_v26 = vpop.f32.mrb[7].mxu0 }
 0x2e2   :  { %v587_v27 = vadd.f32 %v682_v24, %v647_v22 }
 0x2e4   :  { %592 = vst [vmem:[#allocation10] sm:$0xff] %v587_v27 }
 0x2e5   :  { %865 = shalt.err (!%p862_p8)
}
 0x2e6   :  { %s866_s6 = scalar_lea.hbm %s1016_s7, 128 }
 0x2e7   :  { %p867_p9 = scmp.ne.s32.totalorder %s1016_s7, %s866_s6  ;;  %p870_p10 = scmp.lt.u32.totalorder %s866_s6, %s1016_s7 }
 0x2e9   :  { %p872_p11 = pnand %p870_p10, %p867_p9 }
 0x2eb   :  { %875 = shalt.err (!%p872_p11)
}
 0x2ec   :  { %602 = dma.vmem_to_hbm [thread:$0]  %s600_s30, 128, %s1016_s7, [#allocation4]  }
 0x2ed   :  { %882 = dma.done.wait [#allocation4], 128  }
 0x2ee   :  { %883 = vsyncadd [#allocation4], 4294967168 }
 0x2ef   :  { %606 = vsyncpa [#allocation3], 1 }
 0x2f0   :  { %607 = vsyncpa [#allocation6], 1 }
 0x2f1   :  { %608 = vsyncpa [#allocation9], 1 }
 0x2f2   :  { %609 = vsyncpa [#allocation4], 1 }

</bundles_post_ra>
